<compile_context>
chip_gen: v7x
topology: tpu7x:2x2x1
jax: 0.10.0
libtpu: 0.0.40
codegen_flags: <defaults>
</compile_context>

<pallas_src>
import functools

import jax
import jax.numpy as jnp
from jax import lax
from jax.experimental import pallas as pl
from jax.experimental.pallas import tpu as pltpu

_MASK_VALUE = -1e30                 # causal mask value (fp32 softmax path)


def _default_vmem_limit():
    # ~96 MiB on 128-MiB parts (v5e/v6e), ~48 MiB on v7x (64 MiB per TensorCore).
    try:
        cap = int(pltpu.get_tpu_info().vmem_capacity_bytes)
    except Exception:
        cap = 64 * 1024 * 1024
    return max(32 * 1024 * 1024, min((cap * 3) // 4, 96 * 1024 * 1024))


_VMEM_LIMIT = _default_vmem_limit()


def _round_up(x, m):
    return ((x + m - 1) // m) * m


def _pick_tile(dim, preferred, align):
    """Largest tile <= preferred (multiple of `align`) that divides `dim` exactly."""
    if dim <= preferred:
        return dim
    if dim % align != 0:
        return dim
    t = (preferred // align) * align
    while t >= align:
        if dim % t == 0:
            return t
        t -= align
    return dim


# ----------------------------- tiled matmul ------------------------------- #
def _matmul_kernel(x_ref, w_ref, o_ref, acc_ref):
    @pl.when(pl.program_id(2) == 0)
    def _init():
        acc_ref[...] = jnp.zeros(acc_ref.shape, jnp.float32)

    acc_ref[...] += jnp.dot(x_ref[...], w_ref[...],
                            preferred_element_type=jnp.float32)

    @pl.when(pl.program_id(2) == pl.num_programs(2) - 1)
    def _store():
        o_ref[...] = acc_ref[...].astype(o_ref.dtype)


def pallas_matmul(x, w, out_dtype=None, block_m=512, block_n=512, block_k=512):
    M, K = x.shape
    K2, N = w.shape
    assert K == K2
    out_dtype = out_dtype if out_dtype is not None else x.dtype

    tm = _pick_tile(M, block_m, 16)     # 16 = bf16 sublane pack
    tn = _pick_tile(N, block_n, 128)
    tk = _pick_tile(K, block_k, 128)
    grid = (pl.cdiv(M, tm), pl.cdiv(N, tn), pl.cdiv(K, tk))

    return pl.pallas_call(
        _matmul_kernel,
        out_shape=jax.ShapeDtypeStruct((M, N), out_dtype),
        grid=grid,
        in_specs=[
            pl.BlockSpec((tm, tk), lambda i, j, k: (i, k)),
            pl.BlockSpec((tk, tn), lambda i, j, k: (k, j)),
        ],
        out_specs=pl.BlockSpec((tm, tn), lambda i, j, k: (i, j)),
        scratch_shapes=[pltpu.VMEM((tm, tn), jnp.float32)],
        compiler_params=pltpu.CompilerParams(
            dimension_semantics=("parallel", "parallel", "arbitrary"),
            vmem_limit_bytes=_VMEM_LIMIT),
        cost_estimate=pl.CostEstimate(
            flops=int(2 * M * N * K),
            transcendentals=0,
            bytes_accessed=int(M * K * x.dtype.itemsize
                               + K * N * w.dtype.itemsize
                               + M * N * jnp.dtype(out_dtype).itemsize)),
    )(x, w)


# --------------------- RoPE (applied once, Q pre-scaled) -------------------- #
def _rope_kernel(qkv_ref, cos_ref, sin_ref, out_ref, *, H, KVH, D, scale):
    cos = cos_ref[...]                      # [tr, D] f32 = [cos, cos]
    sin = sin_ref[...]                      # [tr, D] f32 = [-sin, sin]

    def rope(x):
        x_rot = jnp.concatenate([x[:, D // 2:], x[:, :D // 2]], axis=-1)
        return x * cos + x_rot * sin

    for h in range(H):                      # Q heads: RoPE + softmax scale
        q = qkv_ref[:, h * D:(h + 1) * D].astype(jnp.float32)
        out_ref[:, h * D:(h + 1) * D] = (rope(q) * scale).astype(out_ref.dtype)
    for h in range(KVH):                    # K heads: RoPE
        c0 = (H + h) * D
        k = qkv_ref[:, c0:c0 + D].astype(jnp.float32)
        out_ref[:, c0:c0 + D] = rope(k).astype(out_ref.dtype)
    v0 = (H + KVH) * D                      # V: pass-through
    out_ref[:, v0:] = qkv_ref[:, v0:]


def pallas_rope(qkv, cos_full, sin_signed, num_heads, num_kv_heads, head_dim,
                scale, block_rows=256):
    T_pad, C = qkv.shape
    tr = _pick_tile(T_pad, block_rows, 128)
    kernel = functools.partial(_rope_kernel, H=num_heads, KVH=num_kv_heads,
                               D=head_dim, scale=scale)
    return pl.pallas_call(
        kernel,
        out_shape=jax.ShapeDtypeStruct((T_pad, C), jnp.bfloat16),
        grid=(T_pad // tr,),
        in_specs=[pl.BlockSpec((tr, C), lambda i: (i, 0)),
                  pl.BlockSpec((tr, head_dim), lambda i: (i, 0)),
                  pl.BlockSpec((tr, head_dim), lambda i: (i, 0))],
        out_specs=pl.BlockSpec((tr, C), lambda i: (i, 0)),
        compiler_params=pltpu.CompilerParams(
            dimension_semantics=("parallel",),
            vmem_limit_bytes=_VMEM_LIMIT),
    )(qkv, cos_full, sin_signed)


# ------------------ flash attention (causal, GQA, pre-roped) ---------------- #
def _balanced_q_index(qi, nq):
    """Permute the q-tile axis (small/large interleave) so a contiguous megacore
    split of the 'parallel' q axis gets a balanced share of causal work."""
    half = qi // 2
    return jnp.where(qi % 2 == 0, half, nq - 1 - half)


def _flash_attn_kernel(q_ref, k_ref, v_ref, o_ref, m_scr, l_scr, acc_scr):
    tq = q_ref.shape[0]
    tk, D = k_ref.shape
    group = q_ref.shape[1] // D          # query heads sharing this KV head (GQA)

    nq = pl.num_programs(1)
    qi = pl.program_id(1)
    ki = pl.program_id(2)
    q_tile = _balanced_q_index(qi, nq)

    q_start = q_tile * tq
    k_start = ki * tk
    last_q = q_start + tq - 1
    last_k = k_start + tk - 1

    @pl.when(ki == 0)
    def _init():
        m_scr[...] = jnp.full(m_scr.shape, -jnp.inf, jnp.float32)
        l_scr[...] = jnp.zeros(l_scr.shape, jnp.float32)
        acc_scr[...] = jnp.zeros(acc_scr.shape, jnp.float32)

    def process(apply_mask):
        k = k_ref[...]                       # [tk, D] bf16, RoPE pre-applied
        v = v_ref[...]                       # [tk, D] bf16
        if apply_mask:
            q_pos = q_start + lax.broadcasted_iota(jnp.int32, (tq, tk), 0)
            k_pos = k_start + lax.broadcasted_iota(jnp.int32, (tq, tk), 1)
            causal = k_pos <= q_pos
        # TODO(synk): switch to lax.fori_loop over g for group >= 4 to bound vreg
        # live ranges; static unroll is fine for small GQA groups.
        for g in range(group):
            q = q_ref[:, g * D:(g + 1) * D]  # bf16, softmax scale pre-folded
            s = lax.dot_general(q, k, (((1,), (1,)), ((), ())),
                                preferred_element_type=jnp.float32)   # [tq, tk]
            if apply_mask:
                s = jnp.where(causal, s, _MASK_VALUE)
            m_prev = m_scr[g]                                         # [tq, 1]
            m_new = jnp.maximum(m_prev, jnp.max(s, axis=-1, keepdims=True))
            alpha = jnp.exp(m_prev - m_new)
            p = jnp.exp(s - m_new)
            l_scr[g] = alpha * l_scr[g] + jnp.sum(p, axis=-1, keepdims=True)
            acc_scr[g] = alpha * acc_scr[g] + lax.dot_general(
                p.astype(jnp.bfloat16), v, (((1,), (0,)), ((), ())),
                preferred_element_type=jnp.float32)
            m_scr[g] = m_new

    # Diagonal blocks: need the causal mask.
    @pl.when(jnp.logical_and(k_start <= last_q, last_k > q_start))
    def _diag():
        process(apply_mask=True)

    # Fully-below-diagonal blocks: every (q, k) pair is causal -> no iota / no vsel.
    @pl.when(last_k <= q_start)
    def _full():
        process(apply_mask=False)

    @pl.when(ki == pl.num_programs(2) - 1)
    def _finalize():
        for g in range(group):
            inv_l = pl.reciprocal(l_scr[g], approx=True)   # EUP reciprocal
            o_ref[:, g * D:(g + 1) * D] = (acc_scr[g] * inv_l).astype(o_ref.dtype)


def pallas_flash_attention(qkv_roped, num_heads, num_kv_heads, head_dim, tq, tk):
    """qkv_roped: [T_pad, (H + 2*KVH) * D] bf16 (RoPE + scale already applied).

    Returns attention output [T_pad, H*D] (bf16, lane-dense)."""
    T_pad = qkv_roped.shape[0]
    H, KVH, D = num_heads, num_kv_heads, head_dim
    group = H // KVH
    nq = T_pad // tq
    nk = T_pad // tk

    def qmap(qi):
        return _balanced_q_index(qi, nq)

    def kv_row(qi, ki):
        # Clamp causally-skipped kv tiles to the last useful tile for this q tile
        # so Pallas sees an unchanged block index and skips the DMA.
        max_ki = (qmap(qi) * tq + tq - 1) // tk
        return jnp.minimum(ki, max_ki)

    # q / k / v are all read straight out of the fused (pre-roped) qkv buffer:
    #   q block: columns [kvh*group*D, (kvh+1)*group*D)   (block width group*D)
    #   k block: column block H + kvh                      (block width D)
    #   v block: column block H + KVH + kvh                (block width D)
    q_spec = pl.BlockSpec((tq, group * D), lambda kvh, qi, ki: (qmap(qi), kvh))
    k_spec = pl.BlockSpec((tk, D), lambda kvh, qi, ki: (kv_row(qi, ki), H + kvh))
    v_spec = pl.BlockSpec((tk, D), lambda kvh, qi, ki: (kv_row(qi, ki), H + KVH + kvh))
    out_spec = pl.BlockSpec((tq, group * D), lambda kvh, qi, ki: (qmap(qi), kvh))

    return pl.pallas_call(
        _flash_attn_kernel,
        out_shape=jax.ShapeDtypeStruct((T_pad, H * D), jnp.bfloat16),
        grid=(KVH, nq, nk),                 # kv-tile axis innermost ("arbitrary")
        in_specs=[q_spec, k_spec, v_spec],
        out_specs=out_spec,
        scratch_shapes=[
            pltpu.VMEM((group, tq, 1), jnp.float32),   # running max  m
            pltpu.VMEM((group, tq, 1), jnp.float32),   # running sum  l
            pltpu.VMEM((group, tq, D), jnp.float32),   # output accumulator
        ],
        compiler_params=pltpu.CompilerParams(
            dimension_semantics=("parallel", "parallel", "arbitrary"),
            vmem_limit_bytes=_VMEM_LIMIT),
        cost_estimate=pl.CostEstimate(
            flops=int(2 * H * T_pad * T_pad * D),      # causal ~ half of 4*H*T^2*D
            transcendentals=int(H * T_pad * T_pad // 2),
            bytes_accessed=int(qkv_roped.size * qkv_roped.dtype.itemsize
                               + T_pad * H * D * 2)),
    )(qkv_roped, qkv_roped, qkv_roped)


# ------------------------------ full module -------------------------------- #
def llama_attention_forward(positions, hidden_states, wqkv, wo,
                            num_heads, num_kv_heads, rope_theta,
                            block_q=512, block_k=256):
    T, hidden = hidden_states.shape
    head_dim = hidden // num_heads
    scaling = head_dim ** -0.5
    compute_dtype = jnp.bfloat16   # bf16 MXU operands; fp32 accumulation in-kernel

    # Attention tiles (tq forced to a multiple of tk) and padded token count so a
    # non-divisible T never falls back to one giant tile.
    tk = min(block_k, _round_up(T, 128))
    tq = min(block_q, _round_up(T, 128))
    tq = max(tk, (tq // tk) * tk)
    T_pad = _round_up(T, tq)

    if T_pad != T:
        hidden_states_p = jnp.pad(hidden_states, ((0, T_pad - T), (0, 0)))
        positions_p = jnp.pad(positions, (0, T_pad - T))
    else:
        hidden_states_p, positions_p = hidden_states, positions

    x = hidden_states_p.astype(compute_dtype)
    wqkv_c = wqkv if wqkv.dtype == compute_dtype else wqkv.astype(compute_dtype)
    wo_c = wo if wo.dtype == compute_dtype else wo.astype(compute_dtype)

    # --- QKV projection (tiled Pallas matmul) ---
    qkv = pallas_matmul(x, wqkv_c, out_dtype=compute_dtype)

    # --- RoPE tables (setup glue, fp32) ---
    inv_freq = 1.0 / (rope_theta ** (jnp.arange(0, head_dim, 2, dtype=jnp.float32)
                                     / head_dim))
    freqs = positions_p.astype(jnp.float32)[:, None] * inv_freq[None, :]  # [T_pad, D/2]
    cos = jnp.cos(freqs)
    sin = jnp.sin(freqs)
    cos_full = jnp.concatenate([cos, cos], axis=-1)        # [T_pad, D]
    sin_signed = jnp.concatenate([-sin, sin], axis=-1)     # [T_pad, D]

    # --- Apply RoPE to Q/K once (scale folded into Q), V passes through ---
    qkv_roped = pallas_rope(qkv, cos_full, sin_signed, num_heads, num_kv_heads,
                            head_dim, scaling)

    # --- Flash attention (causal online softmax, GQA KV reuse) ---
    attn = pallas_flash_attention(qkv_roped, num_heads, num_kv_heads, head_dim,
                                  tq=tq, tk=tk)            # [T_pad, H*D]

    # --- Output projection ---
    out = pallas_matmul(attn, wo_c, out_dtype=hidden_states.dtype)  # [T_pad, hidden]
    return out[:T]


# ------------------------------ pure-JAX ref -------------------------------- #
def reference_forward(positions, hidden_states, wqkv, wo,
                      num_heads, num_kv_heads, rope_theta):
    T, hidden = hidden_states.shape
    head_dim = hidden // num_heads
    q_size = num_heads * head_dim
    kv_size = num_kv_heads * head_dim
    scaling = head_dim ** -0.5

    qkv = hidden_states @ wqkv
    q = qkv[:, :q_size].reshape(T, num_heads, head_dim)
    k = qkv[:, q_size:q_size + kv_size].reshape(T, num_kv_heads, head_dim)
    v = qkv[:, q_size + kv_size:].reshape(T, num_kv_heads, head_dim)

    inv_freq = 1.0 / (rope_theta ** (jnp.arange(0, head_dim, 2, dtype=jnp.float32)
                                     / head_dim))
    freqs = positions.astype(jnp.float32)[:, None] * inv_freq[None, :]
    cos = jnp.cos(freqs)[:, None, :]
    sin = jnp.sin(freqs)[:, None, :]

    def rope(x):
        x1, x2 = x[..., :head_dim // 2], x[..., head_dim // 2:]
        return jnp.concatenate([x1 * cos - x2 * sin, x2 * cos + x1 * sin], axis=-1)

    q, k = rope(q), rope(k)
    group = num_heads // num_kv_heads
    k = jnp.repeat(k, group, axis=1)
    v = jnp.repeat(v, group, axis=1)

    scores = jnp.einsum("thd,shd->hts", q, k) * scaling
    mask = jnp.tril(jnp.ones((T, T), dtype=bool))
    scores = jnp.where(mask[None], scores, _MASK_VALUE)
    p = jax.nn.softmax(scores, axis=-1)
    attn = jnp.einsum("hts,shd->thd", p, v).reshape(T, num_heads * head_dim)
    return attn @ wo


# ---------------------------------- main ------------------------------------ #
if __name__ == "__main__":
    # Small LlamaAttention config: hidden=256, 2 query heads, 1 KV head (GQA group=2),
    # head_dim=128, T=200 tokens of single-sequence prefill (non-multiple of the tile
    # so the padding path is exercised).  block_q/k=128 so the flash kernel exercises
    # multiple q/kv tiles, the causal DMA-clamp/skip, the masked AND unmasked block
    # paths, the q-tile permutation, and the online-softmax carry.
    hidden_size = 256
    num_heads = 2
    num_kv_heads = 1
    head_dim = hidden_size // num_heads
    q_size = num_heads * head_dim
    kv_size = num_kv_heads * head_dim
    rope_theta = 10000.0
    T = 200

    key = jax.random.PRNGKey(0)
    kx, kqkv, ko = jax.random.split(key, 3)
    hidden_states = jax.random.normal(kx, (T, hidden_size), dtype=jnp.float32)
    wqkv = (0.02 * jax.random.normal(
        kqkv, (hidden_size, q_size + 2 * kv_size))).astype(jnp.float32)
    wo = (0.02 * jax.random.normal(
        ko, (q_size, hidden_size))).astype(jnp.float32)
    positions = jnp.arange(T, dtype=jnp.int32)

    # Pre-cast weights to bf16 once (outside the per-call path).
    wqkv_bf16 = wqkv.astype(jnp.bfloat16)
    wo_bf16 = wo.astype(jnp.bfloat16)

    out = llama_attention_forward(positions, hidden_states, wqkv_bf16, wo_bf16,
                                  num_heads, num_kv_heads, rope_theta,
                                  block_q=128, block_k=128)
    out = jax.block_until_ready(out)

    ref = reference_forward(positions, hidden_states, wqkv, wo,
                            num_heads, num_kv_heads, rope_theta)
    assert out.shape == (T, hidden_size)
    assert jnp.allclose(out, ref, atol=5e-3, rtol=5e-2), "mismatch vs reference"

    print("KERNEL_OK")
</pallas_src>

<mosaic_0001>
module attributes {stable_mosaic.version = 11 : i64} {
  func.func @_matmul_kernel(%arg0: i32, %arg1: i32, %arg2: i32, %arg3: memref<256x256xbf16, #tpu.memory_space<vmem>>, %arg4: memref<256x512xbf16, #tpu.memory_space<vmem>>, %arg5: memref<256x512xbf16, #tpu.memory_space<vmem>>, %arg6: memref<256x512xf32, #tpu.memory_space<vmem>>) attributes {dimension_semantics = [#tpu.dimension_semantics<parallel>, #tpu.dimension_semantics<parallel>, #tpu.dimension_semantics<arbitrary>], iteration_bounds = array<i64: 1, 1, 1>, scalar_prefetch = 0 : i64, scratch_operands = 1 : i64, tpu.core_type = #tpu.core_type<tc>, window_params = [{transform_indices = @transform_0, window_bounds = array<i64: 256, 256>}, {transform_indices = @transform_1, window_bounds = array<i64: 256, 512>}, {transform_indices = @transform_2, window_bounds = array<i64: 256, 512>}]} {
    %c0_i32 = arith.constant 0 : i32
    %0 = arith.cmpi eq, %arg2, %c0_i32 : i32
    %1 = arith.extui %0 : i1 to i32
    %c0_i32_0 = arith.constant 0 : i32
    %2 = arith.cmpi ne, %1, %c0_i32_0 : i32
    scf.if %2 {
      %cst_10 = arith.constant 0.000000e+00 : f32
      %12 = vector.broadcast %cst_10 : f32 to vector<256x512xf32>
      %c0_11 = arith.constant 0 : index
      %c0_12 = arith.constant 0 : index
      %13 = vector.load %arg6[%c0_11, %c0_12] : memref<256x512xf32, #tpu.memory_space<vmem>>, vector<256x512xf32>
      tpu.vector_store %arg6[%c0_11, %c0_12], %12 {strides = array<i32>} : memref<256x512xf32, #tpu.memory_space<vmem>>, vector<256x512xf32>,
    } else {
    }
    %c0 = arith.constant 0 : index
    %c0_1 = arith.constant 0 : index
    %3 = vector.load %arg6[%c0, %c0_1] : memref<256x512xf32, #tpu.memory_space<vmem>>, vector<256x512xf32>
    %c0_2 = arith.constant 0 : index
    %c0_3 = arith.constant 0 : index
    %4 = vector.load %arg3[%c0_2, %c0_3] : memref<256x256xbf16, #tpu.memory_space<vmem>>, vector<256x256xbf16>
    %c0_4 = arith.constant 0 : index
    %c0_5 = arith.constant 0 : index
    %5 = vector.load %arg4[%c0_4, %c0_5] : memref<256x512xbf16, #tpu.memory_space<vmem>>, vector<256x512xbf16>
    %cst = arith.constant dense<0.000000e+00> : vector<256x512xf32>
    %6 = tpu.matmul %4, %5, %cst {dimension_numbers = #tpu.dot_dimension_numbers<[1], [0], [0], [1], [0, 0, 1, 1], [], []>} : vector<256x256xbf16>, vector<256x512xbf16>, vector<256x512xf32> -> vector<256x512xf32>
    %7 = arith.addf %3, %6 : vector<256x512xf32>
    %c0_6 = arith.constant 0 : index
    %c0_7 = arith.constant 0 : index
    %8 = vector.load %arg6[%c0_6, %c0_7] : memref<256x512xf32, #tpu.memory_space<vmem>>, vector<256x512xf32>
    tpu.vector_store %arg6[%c0_6, %c0_7], %7 {strides = array<i32>} : memref<256x512xf32, #tpu.memory_space<vmem>>, vector<256x512xf32>,
    %c0_i32_8 = arith.constant 0 : i32
    %9 = arith.cmpi eq, %arg2, %c0_i32_8 : i32
    %10 = arith.extui %9 : i1 to i32
    %c0_i32_9 = arith.constant 0 : i32
    %11 = arith.cmpi ne, %10, %c0_i32_9 : i32
    scf.if %11 {
      %c0_10 = arith.constant 0 : index
      %c0_11 = arith.constant 0 : index
      %12 = vector.load %arg6[%c0_10, %c0_11] : memref<256x512xf32, #tpu.memory_space<vmem>>, vector<256x512xf32>
      %13 = arith.truncf %12 : vector<256x512xf32> to vector<256x512xbf16>
      %c0_12 = arith.constant 0 : index
      %c0_13 = arith.constant 0 : index
      %14 = vector.load %arg5[%c0_12, %c0_13] : memref<256x512xbf16, #tpu.memory_space<vmem>>, vector<256x512xbf16>
      tpu.vector_store %arg5[%c0_12, %c0_13], %13 {strides = array<i32>} : memref<256x512xbf16, #tpu.memory_space<vmem>>, vector<256x512xbf16>,
    } else {
    }
    return
  }
  func.func @transform_0(%arg0: i32, %arg1: i32, %arg2: i32) -> (i32, i32) {
    %c0_i32 = arith.constant 0 : i32
    return %arg0, %arg2 : i32, i32
  }
  func.func @transform_1(%arg0: i32, %arg1: i32, %arg2: i32) -> (i32, i32) {
    %c0_i32 = arith.constant 0 : i32
    return %arg2, %arg1 : i32, i32
  }
  func.func @transform_2(%arg0: i32, %arg1: i32, %arg2: i32) -> (i32, i32) {
    %c0_i32 = arith.constant 0 : i32
    return %arg0, %arg1 : i32, i32
  }
}

</mosaic_0001>

<bundles_post_ra>
// kernel: tpu_custom_call.1
= control target key start
LH: loop header
LB: loop body
LE: loop exit
PB: predicated region body
PF: predicated region fallthrough
CT: control target
= control target key end

     0   :  { %7 = vsyncpa [#allocation4], 0  ;;  %s2626_s0 = inlined_call_operand.hbm [shape: bf16[256,256], index: 0, kind: input, shape index: {}]   ;;  %s2627_s1 = inlined_call_operand.hbm [shape: bf16[256,512], index: 1, kind: input, shape index: {}]   ;;  %s2628_s2 = inlined_call_operand.hbm [shape: bf16[256,512], index: 2, kind: output, shape index: {}]  }
   0x1   :  { %8 = vsyncpa [#allocation7], 0 }
   0x2   :  { %9 = vsyncpa [#allocation5], 0  ;;  %s2562_s9 = smov [#allocation3]   ;;  %s2490_s13 = scalar_lea.hbm %s2626_s0, 4096 }
   0x3   :  { %s15_s10 = sshll.u32 %s2562_s9, 4  ;;  %p2491_p0 = scmp.ne.s32.totalorder %s2626_s0, %s2490_s13  ;;  %s16_s10 = int_to_ptr.vmem [resolvable:$true] %s15_s10 }
   0x4   :  { %p2494_p1 = scmp.lt.u32.totalorder %s2490_s13, %s2626_s0 }
   0x6   :  { %p2496_p2 = pnand %p2494_p1, %p2491_p0 }
   0x8   :  { %2499 = shalt.err (!%p2496_p2)
}
   0x9   :  { %s2500_s18 = scalar_lea.vmem %s16_s10, 4096  ;;  %p2505_p4 = scmp.lt.s32.totalorder %s16_s10, %s16_s10 }
   0xa   :  { %p2501_p3 = scmp.ne.s32.totalorder %s16_s10, %s2500_s18  ;;  %p2506_p5 = scmp.lt.s32.totalorder %s2500_s18, %s2500_s18 }
   0xc   :  { %p2507_p6 = por %p2506_p5, %p2505_p4 }
   0xe   :  { %p2508_p7 = pnand %p2507_p6, %p2501_p3 }
  0x10   :  { %2511 = shalt.err (!%p2508_p7)
}
  0x11   :  { %s2563_s19 = smov 128   ;;  %s2564_s20 = smov 8  }
  0x12   :  { %21 = dma.hbm_to_vmem [thread:$0]  %s2626_s0, 4096, %s16_s10, [#allocation4], %s2563_s19, %s2563_s19, %s2564_s20  }
  0x13   :  { %s2565_s23 = smov [#allocation6]   ;;  %s2512_s27 = scalar_lea.hbm %s2627_s1, 8192 }
  0x14   :  { %s27_s24 = sshll.u32 %s2565_s23, 4  ;;  %p2513_p8 = scmp.ne.s32.totalorder %s2627_s1, %s2512_s27  ;;  %s28_s24 = int_to_ptr.vmem [resolvable:$true] %s27_s24 }
  0x15   :  { %p2516_p9 = scmp.lt.u32.totalorder %s2512_s27, %s2627_s1 }
  0x17   :  { %p2518_p10 = pnand %p2516_p9, %p2513_p8 }
  0x19   :  { %2521 = shalt.err (!%p2518_p10)
}
  0x1a   :  { %s2522_s4 = scalar_lea.vmem %s28_s24, 8192  ;;  %p2527_p12 = scmp.lt.s32.totalorder %s28_s24, %s28_s24 }
  0x1b   :  { %p2523_p11 = scmp.ne.s32.totalorder %s28_s24, %s2522_s4  ;;  %p2528_p13 = scmp.lt.s32.totalorder %s2522_s4, %s2522_s4 }
  0x1d   :  { %p2529_p0 = por %p2528_p13, %p2527_p12 }
  0x1f   :  { %p2530_p1 = pnand %p2529_p0, %p2523_p11 }
  0x21   :  { %2533 = shalt.err (!%p2530_p1)
}
  0x22   :  { %s2566_s0 = smov 256   ;;  %s2567_s5 = smov 16  }
  0x23   :  { %33 = dma.hbm_to_vmem [thread:$0]  %s2627_s1, 8192, %s28_s24, [#allocation7], %s2566_s0, %s2566_s0, %s2567_s5  }
  0x24   :  { %2556 = dma.done.wait [#allocation4], 4096  }
  0x25   :  { %2557 = vsyncadd [#allocation4], 4294963200 }
  0x26   :  { %2558 = dma.done.wait [#allocation7], 8192  }
  0x27   :  { %2559 = vsyncadd [#allocation7], 4294959104  ;;  %v2346_v0 = vld [vmem:[#allocation6 + $0x4] ss:$16 sps:$4 sm:$0xff]   ;;  %v2348_v1 = vld [vmem:[#allocation6 + $0xc] ss:$16 sps:$4 sm:$0xff]  }
  0x28   :  { %876 = vmatprep.subr.bf16.mxu0 %v2346_v0  ;;  %v2350_v2 = vld [vmem:[#allocation6] ss:$16 sps:$4 sm:$0xff]   ;;  %v2351_v3 = vld [vmem:[#allocation6 + $0x8] ss:$16 sps:$4 sm:$0xff]   ;;  %1069 = vmatprep.subr.bf16.mxu1 %v2348_v1  ;;  %v2352_v4 = vld [vmem:[#allocation6 + $0x24] ss:$16 sps:$4 sm:$0xff]  }
  0x29   :  { %877 = vmatpush1.bf16.msra.mxu0 %v2350_v2  ;;  %1070 = vmatpush1.bf16.msra.mxu1 %v2351_v3  ;;  %v2354_v5 = vld [vmem:[#allocation6 + $0x2c] ss:$16 sps:$4 sm:$0xff]   ;;  %v2356_v6 = vld [vmem:[#allocation6 + $0x20] ss:$16 sps:$4 sm:$0xff]   ;;  %v2357_v7 = vld [vmem:[#allocation6 + $0x28] ss:$16 sps:$4 sm:$0xff]  }
  0x2a   :  { %878 = vmatprep.subr.bf16.mxu0 %v2352_v4  ;;  %1071 = vmatprep.subr.bf16.mxu1 %v2354_v5  ;;  %v2358_v8 = vld [vmem:[#allocation6 + $0x44] ss:$16 sps:$4 sm:$0xff]   ;;  %v2360_v9 = vld [vmem:[#allocation6 + $0x4c] ss:$16 sps:$4 sm:$0xff]   ;;  %v2362_v10 = vld [vmem:[#allocation6 + $0x40] ss:$16 sps:$4 sm:$0xff]  }
  0x2b   :  { %v2363_v11 = vld [vmem:[#allocation6 + $0x48] ss:$16 sps:$4 sm:$0xff]   ;;  %v2364_v12 = vld [vmem:[#allocation6 + $0x64] ss:$16 sps:$4 sm:$0xff]   ;;  %v2366_v13 = vld [vmem:[#allocation6 + $0x6c] ss:$16 sps:$4 sm:$0xff]  }
  0x2c   :  { %v2368_v14 = vld [vmem:[#allocation6 + $0x60] ss:$16 sps:$4 sm:$0xff]   ;;  %v2369_v15 = vld [vmem:[#allocation6 + $0x68] ss:$16 sps:$4 sm:$0xff]   ;;  %v2370_v16 = vld [vmem:[#allocation6 + $0x84] ss:$16 sps:$4 sm:$0xff]  }
  0x2d   :  { %879 = vmatpush1.bf16.msra.mxu0 %v2356_v6  ;;  %1072 = vmatpush1.bf16.msra.mxu1 %v2357_v7  ;;  %v2372_v17 = vld [vmem:[#allocation6 + $0x8c] ss:$16 sps:$4 sm:$0xff]   ;;  %v2374_v18 = vld [vmem:[#allocation6 + $0x80] ss:$16 sps:$4 sm:$0xff]   ;;  %v2375_v19 = vld [vmem:[#allocation6 + $0x88] ss:$16 sps:$4 sm:$0xff]  }
  0x2e   :  { %880 = vmatprep.subr.bf16.mxu0 %v2358_v8  ;;  %1073 = vmatprep.subr.bf16.mxu1 %v2360_v9  ;;  %v2376_v20 = vld [vmem:[#allocation6 + $0xa4] ss:$16 sps:$4 sm:$0xff]   ;;  %v2378_v21 = vld [vmem:[#allocation6 + $0xac] ss:$16 sps:$4 sm:$0xff]   ;;  %v2380_v22 = vld [vmem:[#allocation6 + $0xa0] ss:$16 sps:$4 sm:$0xff]  }
  0x2f   :  { %v2381_v23 = vld [vmem:[#allocation6 + $0xa8] ss:$16 sps:$4 sm:$0xff]   ;;  %v2382_v24 = vld [vmem:[#allocation6 + $0xc4] ss:$16 sps:$4 sm:$0xff]   ;;  %v2384_v25 = vld [vmem:[#allocation6 + $0xcc] ss:$16 sps:$4 sm:$0xff]  }
  0x30   :  { %v2386_v26 = vld [vmem:[#allocation6 + $0xc0] ss:$16 sps:$4 sm:$0xff]   ;;  %v2387_v27 = vld [vmem:[#allocation6 + $0xc8] ss:$16 sps:$4 sm:$0xff]   ;;  %v2388_v28 = vld [vmem:[#allocation6 + $0xe4] ss:$16 sps:$4 sm:$0xff]  }
  0x31   :  { %881 = vmatpush1.bf16.msra.mxu0 %v2362_v10  ;;  %1074 = vmatpush1.bf16.msra.mxu1 %v2363_v11  ;;  %v2390_v29 = vld [vmem:[#allocation6 + $0xec] ss:$16 sps:$4 sm:$0xff]   ;;  %v2392_v30 = vld [vmem:[#allocation6 + $0xe0] ss:$16 sps:$4 sm:$0xff]   ;;  %v2393_v31 = vld [vmem:[#allocation6 + $0xe8] ss:$16 sps:$4 sm:$0xff]  }
  0x32   :  { %882 = vmatprep.subr.bf16.mxu0 %v2364_v12  ;;  %1075 = vmatprep.subr.bf16.mxu1 %v2366_v13  ;;  %v2394_v32 = vld [vmem:[#allocation6 + $0x104] ss:$16 sps:$4 sm:$0xff]   ;;  %v2396_v33 = vld [vmem:[#allocation6 + $0x10c] ss:$16 sps:$4 sm:$0xff]   ;;  %v2398_v34 = vld [vmem:[#allocation6 + $0x100] ss:$16 sps:$4 sm:$0xff]  }
  0x33   :  { %v2399_v35 = vld [vmem:[#allocation6 + $0x108] ss:$16 sps:$4 sm:$0xff]   ;;  %v2400_v36 = vld [vmem:[#allocation6 + $0x124] ss:$16 sps:$4 sm:$0xff]   ;;  %v2402_v37 = vld [vmem:[#allocation6 + $0x12c] ss:$16 sps:$4 sm:$0xff]  }
  0x34   :  { %v2404_v38 = vld [vmem:[#allocation6 + $0x120] ss:$16 sps:$4 sm:$0xff]   ;;  %v2405_v39 = vld [vmem:[#allocation6 + $0x128] ss:$16 sps:$4 sm:$0xff]   ;;  %v2406_v40 = vld [vmem:[#allocation6 + $0x144] ss:$16 sps:$4 sm:$0xff]  }
  0x35   :  { %883 = vmatpush1.bf16.msra.mxu0 %v2368_v14  ;;  %1076 = vmatpush1.bf16.msra.mxu1 %v2369_v15  ;;  %v2408_v41 = vld [vmem:[#allocation6 + $0x14c] ss:$16 sps:$4 sm:$0xff]   ;;  %v2410_v42 = vld [vmem:[#allocation6 + $0x140] ss:$16 sps:$4 sm:$0xff]   ;;  %v2411_v43 = vld [vmem:[#allocation6 + $0x148] ss:$16 sps:$4 sm:$0xff]  }
  0x36   :  { %884 = vmatprep.subr.bf16.mxu0 %v2370_v16  ;;  %1077 = vmatprep.subr.bf16.mxu1 %v2372_v17  ;;  %v2412_v44 = vld [vmem:[#allocation6 + $0x164] ss:$16 sps:$4 sm:$0xff]   ;;  %v2414_v45 = vld [vmem:[#allocation6 + $0x16c] ss:$16 sps:$4 sm:$0xff]   ;;  %v2416_v46 = vld [vmem:[#allocation6 + $0x160] ss:$16 sps:$4 sm:$0xff]  }
  0x37   :  { %v2417_v47 = vld [vmem:[#allocation6 + $0x168] ss:$16 sps:$4 sm:$0xff]   ;;  %v2444_v48 = vld [vmem:[#allocation3 + $0x4] ss:$8 sps:$4 sm:$0xff]   ;;  %v2422_v51 = vld [vmem:[#allocation6 + $0x180] ss:$16 sps:$4 sm:$0xff]  }
  0x38   :  { %v2418_v49 = vld [vmem:[#allocation6 + $0x184] ss:$16 sps:$4 sm:$0xff]   ;;  %v2420_v50 = vld [vmem:[#allocation6 + $0x18c] ss:$16 sps:$4 sm:$0xff]   ;;  %908 = vmatprep.mubr.bf16.mxu0 %v2444_v48  ;;  %1101 = vmatprep.mubr.bf16.mxu1 %v2444_v48  ;;  %v2423_v52 = vld [vmem:[#allocation6 + $0x188] ss:$16 sps:$4 sm:$0xff]  }
  0x39   :  { %885 = vmatpush1.bf16.msra.mxu0 %v2374_v18  ;;  %1078 = vmatpush1.bf16.msra.mxu1 %v2375_v19  ;;  %v2424_v53 = vld [vmem:[#allocation6 + $0x1a4] ss:$16 sps:$4 sm:$0xff]   ;;  %v2426_v54 = vld [vmem:[#allocation6 + $0x1ac] ss:$16 sps:$4 sm:$0xff]   ;;  %v2428_v55 = vld [vmem:[#allocation6 + $0x1a0] ss:$16 sps:$4 sm:$0xff]  }
  0x3a   :  { %886 = vmatprep.subr.bf16.mxu0 %v2376_v20  ;;  %1079 = vmatprep.subr.bf16.mxu1 %v2378_v21  ;;  %v2429_v56 = vld [vmem:[#allocation6 + $0x1a8] ss:$16 sps:$4 sm:$0xff]   ;;  %v2430_v57 = vld [vmem:[#allocation6 + $0x1c4] ss:$16 sps:$4 sm:$0xff]   ;;  %v2432_v58 = vld [vmem:[#allocation6 + $0x1cc] ss:$16 sps:$4 sm:$0xff]  }
  0x3b   :  { %v2434_v59 = vld [vmem:[#allocation6 + $0x1c0] ss:$16 sps:$4 sm:$0xff]   ;;  %v2435_v60 = vld [vmem:[#allocation6 + $0x1c8] ss:$16 sps:$4 sm:$0xff]   ;;  %v2436_v61 = vld [vmem:[#allocation6 + $0x1e4] ss:$16 sps:$4 sm:$0xff]  }
  0x3c   :  { %v2438_v62 = vld [vmem:[#allocation6 + $0x1ec] ss:$16 sps:$4 sm:$0xff]   ;;  %v2440_v63 = vld [vmem:[#allocation6 + $0x1e0] ss:$16 sps:$4 sm:$0xff]   ;;  %v2441_v0 = vld [vmem:[#allocation6 + $0x1e8] ss:$16 sps:$4 sm:$0xff]  }
  0x3d   :  { %887 = vmatpush1.bf16.msra.mxu0 %v2380_v22  ;;  %1080 = vmatpush1.bf16.msra.mxu1 %v2381_v23  ;;  %v2442_v1 = vld [vmem:[#allocation3] ss:$8 sps:$4 sm:$0xff]   ;;  %v2445_v2 = vld [vmem:[#allocation3 + $0x14] ss:$8 sps:$4 sm:$0xff]   ;;  %v2447_v3 = vld [vmem:[#allocation3 + $0x10] ss:$8 sps:$4 sm:$0xff]  }
  0x3e   :  { %888 = vmatprep.subr.bf16.mxu0 %v2382_v24  ;;  %1081 = vmatprep.subr.bf16.mxu1 %v2384_v25  ;;  %v2448_v4 = vld [vmem:[#allocation3 + $0x24] ss:$8 sps:$4 sm:$0xff]   ;;  %v2450_v5 = vld [vmem:[#allocation3 + $0x20] ss:$8 sps:$4 sm:$0xff]   ;;  %v2451_v6 = vld [vmem:[#allocation3 + $0x34] ss:$8 sps:$4 sm:$0xff]  }
  0x3f   :  { %v2453_v7 = vld [vmem:[#allocation3 + $0x30] ss:$8 sps:$4 sm:$0xff]   ;;  %v2454_v8 = vld [vmem:[#allocation3 + $0x44] ss:$8 sps:$4 sm:$0xff]   ;;  %v2456_v9 = vld [vmem:[#allocation3 + $0x40] ss:$8 sps:$4 sm:$0xff]  }
  0x40   :  { %v2457_v10 = vld [vmem:[#allocation3 + $0x54] ss:$8 sps:$4 sm:$0xff]   ;;  %v2459_v11 = vld [vmem:[#allocation3 + $0x50] ss:$8 sps:$4 sm:$0xff]   ;;  %v2460_v12 = vld [vmem:[#allocation3 + $0x64] ss:$8 sps:$4 sm:$0xff]  }
  0x41   :  { %889 = vmatpush1.bf16.msra.mxu0 %v2386_v26  ;;  %1082 = vmatpush1.bf16.msra.mxu1 %v2387_v27  ;;  %v2462_v13 = vld [vmem:[#allocation3 + $0x60] ss:$8 sps:$4 sm:$0xff]   ;;  %v2463_v14 = vld [vmem:[#allocation3 + $0x74] ss:$8 sps:$4 sm:$0xff]   ;;  %v2465_v15 = vld [vmem:[#allocation3 + $0x70] ss:$8 sps:$4 sm:$0xff]  }
  0x42   :  { %890 = vmatprep.subr.bf16.mxu0 %v2388_v28  ;;  %1083 = vmatprep.subr.bf16.mxu1 %v2390_v29  ;;  %v2466_v16 = vld [vmem:[#allocation3 + $0x84] ss:$8 sps:$4 sm:$0xff]   ;;  %v2468_v17 = vld [vmem:[#allocation3 + $0x80] ss:$8 sps:$4 sm:$0xff]   ;;  %v2469_v18 = vld [vmem:[#allocation3 + $0x94] ss:$8 sps:$4 sm:$0xff]  }
  0x43   :  { %v2471_v19 = vld [vmem:[#allocation3 + $0x90] ss:$8 sps:$4 sm:$0xff]   ;;  %v2472_v20 = vld [vmem:[#allocation3 + $0xa4] ss:$8 sps:$4 sm:$0xff]   ;;  %v2474_v21 = vld [vmem:[#allocation3 + $0xa0] ss:$8 sps:$4 sm:$0xff]  }
  0x44   :  { %v2475_v22 = vld [vmem:[#allocation3 + $0xb4] ss:$8 sps:$4 sm:$0xff]   ;;  %v2477_v23 = vld [vmem:[#allocation3 + $0xb0] ss:$8 sps:$4 sm:$0xff]   ;;  %v2478_v24 = vld [vmem:[#allocation3 + $0xc4] ss:$8 sps:$4 sm:$0xff]  }
  0x45   :  { %891 = vmatpush1.bf16.msra.mxu0 %v2392_v30  ;;  %1084 = vmatpush1.bf16.msra.mxu1 %v2393_v31  ;;  %v2480_v25 = vld [vmem:[#allocation3 + $0xc0] ss:$8 sps:$4 sm:$0xff]   ;;  %v2481_v26 = vld [vmem:[#allocation3 + $0xd4] ss:$8 sps:$4 sm:$0xff]   ;;  %v2483_v27 = vld [vmem:[#allocation3 + $0xd0] ss:$8 sps:$4 sm:$0xff]  }
  0x46   :  { %892 = vmatprep.subr.bf16.mxu0 %v2394_v32  ;;  %1085 = vmatprep.subr.bf16.mxu1 %v2396_v33  ;;  %v2484_v28 = vld [vmem:[#allocation3 + $0xe4] ss:$8 sps:$4 sm:$0xff]   ;;  %v2486_v29 = vld [vmem:[#allocation3 + $0xe0] ss:$8 sps:$4 sm:$0xff]   ;;  %v2487_v30 = vld [vmem:[#allocation3 + $0xf4] ss:$8 sps:$4 sm:$0xff]  }
  0x47   :  { %v2489_v31 = vld [vmem:[#allocation3 + $0xf0] ss:$8 sps:$4 sm:$0xff]   ;;  %s2568_s1 = smov [#allocation8]  }
  0x48   :  { %s2102_s8 = sshll.u32 %s2568_s1, 4  ;;  %s2103_s8 = int_to_ptr.vmem [resolvable:$true] %s2102_s8 }
  0x49   :  { %893 = vmatpush1.bf16.msra.mxu0 %v2398_v34  ;;  %1086 = vmatpush1.bf16.msra.mxu1 %v2399_v35  ;;  %s2534_s9 = scalar_lea.vmem %s2103_s8, 8192  ;;  %p2539_p3 = scmp.lt.s32.totalorder %s2103_s8, %s2103_s8 }
  0x4a   :  { %894 = vmatprep.subr.bf16.mxu0 %v2400_v36  ;;  %1087 = vmatprep.subr.bf16.mxu1 %v2402_v37  ;;  %p2535_p2 = scmp.ne.s32.totalorder %s2103_s8, %s2534_s9  ;;  %p2540_p4 = scmp.lt.s32.totalorder %s2534_s9, %s2534_s9 }
  0x4c   :  { %p2541_p5 = por %p2540_p4, %p2539_p3 }
  0x4d   :  { %895 = vmatpush1.bf16.msra.mxu0 %v2404_v38  ;;  %1088 = vmatpush1.bf16.msra.mxu1 %v2405_v39 }
  0x4e   :  { %896 = vmatprep.subr.bf16.mxu0 %v2406_v40  ;;  %1089 = vmatprep.subr.bf16.mxu1 %v2408_v41  ;;  %p2542_p6 = pnand %p2541_p5, %p2535_p2 }
  0x51   :  { %897 = vmatpush1.bf16.msra.mxu0 %v2410_v42  ;;  %1090 = vmatpush1.bf16.msra.mxu1 %v2411_v43 }
  0x52   :  { %898 = vmatprep.subr.bf16.mxu0 %v2412_v44  ;;  %1091 = vmatprep.subr.bf16.mxu1 %v2414_v45 }
  0x55   :  { %899 = vmatpush1.bf16.msra.mxu0 %v2416_v46  ;;  %1092 = vmatpush1.bf16.msra.mxu1 %v2417_v47 }
  0x56   :  { %900 = vmatprep.subr.bf16.mxu0 %v2418_v49  ;;  %1093 = vmatprep.subr.bf16.mxu1 %v2420_v50 }
  0x59   :  { %901 = vmatpush1.bf16.msra.mxu0 %v2422_v51  ;;  %1094 = vmatpush1.bf16.msra.mxu1 %v2423_v52 }
  0x5a   :  { %902 = vmatprep.subr.bf16.mxu0 %v2424_v53  ;;  %1095 = vmatprep.subr.bf16.mxu1 %v2426_v54 }
  0x5d   :  { %903 = vmatpush1.bf16.msra.mxu0 %v2428_v55  ;;  %1096 = vmatpush1.bf16.msra.mxu1 %v2429_v56 }
  0x5e   :  { %904 = vmatprep.subr.bf16.mxu0 %v2430_v57  ;;  %1097 = vmatprep.subr.bf16.mxu1 %v2432_v58 }
  0x61   :  { %905 = vmatpush1.bf16.msra.mxu0 %v2434_v59  ;;  %1098 = vmatpush1.bf16.msra.mxu1 %v2435_v60 }
  0x62   :  { %906 = vmatprep.subr.bf16.mxu0 %v2436_v61  ;;  %1099 = vmatprep.subr.bf16.mxu1 %v2438_v62 }
  0x65   :  { %907 = vmatpush1.bf16.msra.mxu0 %v2440_v63  ;;  %1100 = vmatpush1.bf16.msra.mxu1 %v2441_v0 }
  0x68   :  { %909 = vmatmul.mubr.bf16.vlgmr.msra.gmra.mrb[0].mxu0 %v2442_v1  ;;  %1102 = vmatmul.mubr.bf16.vlgmr.msra.gmra.mrb[0].mxu1 %v2442_v1 }
  0x69   :  { %918 = vmatprep.mubr.bf16.mxu0 %v2445_v2  ;;  %1111 = vmatprep.mubr.bf16.mxu1 %v2445_v2 }
  0x70   :  { %919 = vmatmul.mubr.bf16.gmra.mrb[4].mxu0 %v2447_v3  ;;  %1112 = vmatmul.mubr.bf16.gmra.mrb[4].mxu1 %v2447_v3 }
  0x71   :  { %928 = vmatprep.mubr.bf16.mxu0 %v2448_v4  ;;  %1121 = vmatprep.mubr.bf16.mxu1 %v2448_v4 }
  0x78   :  { %929 = vmatmul.mubr.bf16.gmra.mrb[8].mxu0 %v2450_v5  ;;  %1122 = vmatmul.mubr.bf16.gmra.mrb[8].mxu1 %v2450_v5 }
  0x79   :  { %938 = vmatprep.mubr.bf16.mxu0 %v2451_v6  ;;  %1131 = vmatprep.mubr.bf16.mxu1 %v2451_v6 }
  0x80   :  { %939 = vmatmul.mubr.bf16.gmra.mrb[12].mxu0 %v2453_v7  ;;  %1132 = vmatmul.mubr.bf16.gmra.mrb[12].mxu1 %v2453_v7 }
  0x81   :  { %948 = vmatprep.mubr.bf16.mxu0 %v2454_v8  ;;  %1141 = vmatprep.mubr.bf16.mxu1 %v2454_v8 }
  0x88   :  { %949 = vmatmul.mubr.bf16.gmra.mrb[16].mxu0 %v2456_v9  ;;  %1142 = vmatmul.mubr.bf16.gmra.mrb[16].mxu1 %v2456_v9 }
  0x89   :  { %958 = vmatprep.mubr.bf16.mxu0 %v2457_v10  ;;  %1151 = vmatprep.mubr.bf16.mxu1 %v2457_v10 }
  0x90   :  { %959 = vmatmul.mubr.bf16.gmra.mrb[20].mxu0 %v2459_v11  ;;  %1152 = vmatmul.mubr.bf16.gmra.mrb[20].mxu1 %v2459_v11 }
  0x91   :  { %968 = vmatprep.mubr.bf16.mxu0 %v2460_v12  ;;  %1161 = vmatprep.mubr.bf16.mxu1 %v2460_v12 }
  0x98   :  { %969 = vmatmul.mubr.bf16.gmra.mrb[24].mxu0 %v2462_v13  ;;  %1162 = vmatmul.mubr.bf16.gmra.mrb[24].mxu1 %v2462_v13 }
  0x99   :  { %978 = vmatprep.mubr.bf16.mxu0 %v2463_v14  ;;  %1171 = vmatprep.mubr.bf16.mxu1 %v2463_v14 }
  0xa0   :  { %979 = vmatmul.mubr.bf16.gmra.mrb[28].mxu0 %v2465_v15  ;;  %1172 = vmatmul.mubr.bf16.gmra.mrb[28].mxu1 %v2465_v15 }
  0xa1   :  { %988 = vmatprep.mubr.bf16.mxu0 %v2466_v16  ;;  %1181 = vmatprep.mubr.bf16.mxu1 %v2466_v16 }
  0xa8   :  { %989 = vmatmul.mubr.bf16.gmra.mrb[32].mxu0 %v2468_v17  ;;  %1182 = vmatmul.mubr.bf16.gmra.mrb[32].mxu1 %v2468_v17 }
  0xa9   :  { %998 = vmatprep.mubr.bf16.mxu0 %v2469_v18  ;;  %1191 = vmatprep.mubr.bf16.mxu1 %v2469_v18 }
  0xb0   :  { %999 = vmatmul.mubr.bf16.gmra.mrb[36].mxu0 %v2471_v19  ;;  %1192 = vmatmul.mubr.bf16.gmra.mrb[36].mxu1 %v2471_v19 }
  0xb1   :  { %1008 = vmatprep.mubr.bf16.mxu0 %v2472_v20  ;;  %1201 = vmatprep.mubr.bf16.mxu1 %v2472_v20 }
  0xb8   :  { %1009 = vmatmul.mubr.bf16.gmra.mrb[40].mxu0 %v2474_v21  ;;  %1202 = vmatmul.mubr.bf16.gmra.mrb[40].mxu1 %v2474_v21 }
  0xb9   :  { %1018 = vmatprep.mubr.bf16.mxu0 %v2475_v22  ;;  %1211 = vmatprep.mubr.bf16.mxu1 %v2475_v22 }
  0xc0   :  { %1019 = vmatmul.mubr.bf16.gmra.mrb[44].mxu0 %v2477_v23  ;;  %1212 = vmatmul.mubr.bf16.gmra.mrb[44].mxu1 %v2477_v23 }
  0xc1   :  { %1028 = vmatprep.mubr.bf16.mxu0 %v2478_v24  ;;  %1221 = vmatprep.mubr.bf16.mxu1 %v2478_v24 }
  0xc8   :  { %1029 = vmatmul.mubr.bf16.gmra.mrb[48].mxu0 %v2480_v25  ;;  %1222 = vmatmul.mubr.bf16.gmra.mrb[48].mxu1 %v2480_v25 }
  0xc9   :  { %1038 = vmatprep.mubr.bf16.mxu0 %v2481_v26  ;;  %1231 = vmatprep.mubr.bf16.mxu1 %v2481_v26 }
  0xd0   :  { %1039 = vmatmul.mubr.bf16.gmra.mrb[52].mxu0 %v2483_v27  ;;  %1232 = vmatmul.mubr.bf16.gmra.mrb[52].mxu1 %v2483_v27 }
  0xd1   :  { %1048 = vmatprep.mubr.bf16.mxu0 %v2484_v28  ;;  %1241 = vmatprep.mubr.bf16.mxu1 %v2484_v28 }
  0xd8   :  { %1049 = vmatmul.mubr.bf16.gmra.mrb[56].mxu0 %v2486_v29  ;;  %1242 = vmatmul.mubr.bf16.gmra.mrb[56].mxu1 %v2486_v29 }
  0xd9   :  { %1058 = vmatprep.mubr.bf16.mxu0 %v2487_v30  ;;  %1251 = vmatprep.mubr.bf16.mxu1 %v2487_v30 }
  0xe0   :  { %1059 = vmatmul.mubr.bf16.gmra.mrb[60].mxu0 %v2489_v31  ;;  %1252 = vmatmul.mubr.bf16.gmra.mrb[60].mxu1 %v2489_v31 }
 0x13b   :  { %v910_v32 = vpop.f32.mrb[0].mxu0  ;;  %v1103_v33 = vpop.f32.mrb[0].mxu1 }
 0x13c   :  { %v912_v34 = vpop.f32.mrb[1].mxu0  ;;  %v1105_v35 = vpop.f32.mrb[1].mxu1 }
 0x13d   :  { %v2275_v36 = vpack.c.bf16 %v912_v34, %v910_v32  ;;  %v2276_v37 = vpack.c.bf16 %v1105_v35, %v1103_v33  ;;  %v914_v38 = vpop.f32.mrb[2].mxu0  ;;  %v1107_v39 = vpop.f32.mrb[2].mxu1 }
 0x13e   :  { %v916_v40 = vpop.f32.mrb[3].mxu0  ;;  %v1109_v41 = vpop.f32.mrb[3].mxu1 }
 0x13f   :  { %2033 = vst [vmem:[#allocation8] sm:$0xff] %v2275_v36  ;;  %2034 = vst [vmem:[#allocation8 + $0x8] sm:$0xff] %v2276_v37  ;;  %v2277_v42 = vpack.c.bf16 %v916_v40, %v914_v38  ;;  %v2278_v43 = vpack.c.bf16 %v1109_v41, %v1107_v39 }
 0x141   :  { %2035 = vst [vmem:[#allocation8 + $0x10] sm:$0xff] %v2277_v42  ;;  %2036 = vst [vmem:[#allocation8 + $0x18] sm:$0xff] %v2278_v43 }
 0x143   :  { %v920_v44 = vpop.f32.mrb[4].mxu0  ;;  %v1113_v45 = vpop.f32.mrb[4].mxu1 }
 0x144   :  { %v922_v46 = vpop.f32.mrb[5].mxu0  ;;  %v1115_v47 = vpop.f32.mrb[5].mxu1 }
 0x145   :  { %v2279_v48 = vpack.c.bf16 %v922_v46, %v920_v44  ;;  %v2280_v49 = vpack.c.bf16 %v1115_v47, %v1113_v45  ;;  %v924_v50 = vpop.f32.mrb[6].mxu0  ;;  %v1117_v51 = vpop.f32.mrb[6].mxu1 }
 0x146   :  { %v926_v52 = vpop.f32.mrb[7].mxu0  ;;  %v1119_v53 = vpop.f32.mrb[7].mxu1 }
 0x147   :  { %2037 = vst [vmem:[#allocation8 + $0x20] sm:$0xff] %v2279_v48  ;;  %2038 = vst [vmem:[#allocation8 + $0x28] sm:$0xff] %v2280_v49  ;;  %v2281_v54 = vpack.c.bf16 %v926_v52, %v924_v50  ;;  %v2282_v55 = vpack.c.bf16 %v1119_v53, %v1117_v51 }
 0x149   :  { %2039 = vst [vmem:[#allocation8 + $0x30] sm:$0xff] %v2281_v54  ;;  %2040 = vst [vmem:[#allocation8 + $0x38] sm:$0xff] %v2282_v55 }
 0x14b   :  { %v930_v56 = vpop.f32.mrb[8].mxu0  ;;  %v1123_v57 = vpop.f32.mrb[8].mxu1 }
 0x14c   :  { %v932_v58 = vpop.f32.mrb[9].mxu0  ;;  %v1125_v59 = vpop.f32.mrb[9].mxu1 }
 0x14d   :  { %v2283_v60 = vpack.c.bf16 %v932_v58, %v930_v56  ;;  %v2284_v61 = vpack.c.bf16 %v1125_v59, %v1123_v57  ;;  %v934_v62 = vpop.f32.mrb[10].mxu0  ;;  %v1127_v63 = vpop.f32.mrb[10].mxu1 }
 0x14e   :  { %v936_v0 = vpop.f32.mrb[11].mxu0  ;;  %v1129_v1 = vpop.f32.mrb[11].mxu1 }
 0x14f   :  { %2041 = vst [vmem:[#allocation8 + $0x40] sm:$0xff] %v2283_v60  ;;  %2042 = vst [vmem:[#allocation8 + $0x48] sm:$0xff] %v2284_v61  ;;  %v2285_v2 = vpack.c.bf16 %v936_v0, %v934_v62  ;;  %v2286_v3 = vpack.c.bf16 %v1129_v1, %v1127_v63 }
 0x151   :  { %2043 = vst [vmem:[#allocation8 + $0x50] sm:$0xff] %v2285_v2  ;;  %2044 = vst [vmem:[#allocation8 + $0x58] sm:$0xff] %v2286_v3 }
 0x153   :  { %v940_v4 = vpop.f32.mrb[12].mxu0  ;;  %v1133_v5 = vpop.f32.mrb[12].mxu1 }
 0x154   :  { %v942_v6 = vpop.f32.mrb[13].mxu0  ;;  %v1135_v7 = vpop.f32.mrb[13].mxu1 }
 0x155   :  { %v2287_v8 = vpack.c.bf16 %v942_v6, %v940_v4  ;;  %v2288_v9 = vpack.c.bf16 %v1135_v7, %v1133_v5  ;;  %v944_v10 = vpop.f32.mrb[14].mxu0  ;;  %v1137_v11 = vpop.f32.mrb[14].mxu1 }
 0x156   :  { %v946_v12 = vpop.f32.mrb[15].mxu0  ;;  %v1139_v13 = vpop.f32.mrb[15].mxu1 }
 0x157   :  { %2045 = vst [vmem:[#allocation8 + $0x60] sm:$0xff] %v2287_v8  ;;  %2046 = vst [vmem:[#allocation8 + $0x68] sm:$0xff] %v2288_v9  ;;  %v2289_v14 = vpack.c.bf16 %v946_v12, %v944_v10  ;;  %v2290_v15 = vpack.c.bf16 %v1139_v13, %v1137_v11 }
 0x159   :  { %2047 = vst [vmem:[#allocation8 + $0x70] sm:$0xff] %v2289_v14  ;;  %2048 = vst [vmem:[#allocation8 + $0x78] sm:$0xff] %v2290_v15 }
 0x15b   :  { %v950_v16 = vpop.f32.mrb[16].mxu0  ;;  %v1143_v17 = vpop.f32.mrb[16].mxu1 }
 0x15c   :  { %v952_v18 = vpop.f32.mrb[17].mxu0  ;;  %v1145_v19 = vpop.f32.mrb[17].mxu1 }
 0x15d   :  { %v2291_v20 = vpack.c.bf16 %v952_v18, %v950_v16  ;;  %v2292_v21 = vpack.c.bf16 %v1145_v19, %v1143_v17  ;;  %v954_v22 = vpop.f32.mrb[18].mxu0  ;;  %v1147_v23 = vpop.f32.mrb[18].mxu1 }
 0x15e   :  { %v956_v24 = vpop.f32.mrb[19].mxu0  ;;  %v1149_v25 = vpop.f32.mrb[19].mxu1 }
 0x15f   :  { %2049 = vst [vmem:[#allocation8 + $0x80] sm:$0xff] %v2291_v20  ;;  %2050 = vst [vmem:[#allocation8 + $0x88] sm:$0xff] %v2292_v21  ;;  %v2293_v26 = vpack.c.bf16 %v956_v24, %v954_v22  ;;  %v2294_v27 = vpack.c.bf16 %v1149_v25, %v1147_v23 }
 0x161   :  { %2051 = vst [vmem:[#allocation8 + $0x90] sm:$0xff] %v2293_v26  ;;  %2052 = vst [vmem:[#allocation8 + $0x98] sm:$0xff] %v2294_v27 }
 0x163   :  { %v960_v28 = vpop.f32.mrb[20].mxu0  ;;  %v1153_v29 = vpop.f32.mrb[20].mxu1 }
 0x164   :  { %v962_v30 = vpop.f32.mrb[21].mxu0  ;;  %v1155_v31 = vpop.f32.mrb[21].mxu1 }
 0x165   :  { %v2295_v32 = vpack.c.bf16 %v962_v30, %v960_v28  ;;  %v2296_v33 = vpack.c.bf16 %v1155_v31, %v1153_v29  ;;  %v964_v34 = vpop.f32.mrb[22].mxu0  ;;  %v1157_v35 = vpop.f32.mrb[22].mxu1 }
 0x166   :  { %v966_v36 = vpop.f32.mrb[23].mxu0  ;;  %v1159_v37 = vpop.f32.mrb[23].mxu1 }
 0x167   :  { %2053 = vst [vmem:[#allocation8 + $0xa0] sm:$0xff] %v2295_v32  ;;  %2054 = vst [vmem:[#allocation8 + $0xa8] sm:$0xff] %v2296_v33  ;;  %v2297_v38 = vpack.c.bf16 %v966_v36, %v964_v34  ;;  %v2298_v39 = vpack.c.bf16 %v1159_v37, %v1157_v35 }
 0x169   :  { %2055 = vst [vmem:[#allocation8 + $0xb0] sm:$0xff] %v2297_v38  ;;  %2056 = vst [vmem:[#allocation8 + $0xb8] sm:$0xff] %v2298_v39 }
 0x16b   :  { %v970_v40 = vpop.f32.mrb[24].mxu0  ;;  %v1163_v41 = vpop.f32.mrb[24].mxu1 }
 0x16c   :  { %v972_v42 = vpop.f32.mrb[25].mxu0  ;;  %v1165_v43 = vpop.f32.mrb[25].mxu1 }
 0x16d   :  { %v2299_v44 = vpack.c.bf16 %v972_v42, %v970_v40  ;;  %v2300_v45 = vpack.c.bf16 %v1165_v43, %v1163_v41  ;;  %v974_v46 = vpop.f32.mrb[26].mxu0  ;;  %v1167_v47 = vpop.f32.mrb[26].mxu1 }
 0x16e   :  { %v976_v48 = vpop.f32.mrb[27].mxu0  ;;  %v1169_v49 = vpop.f32.mrb[27].mxu1 }
 0x16f   :  { %2057 = vst [vmem:[#allocation8 + $0xc0] sm:$0xff] %v2299_v44  ;;  %2058 = vst [vmem:[#allocation8 + $0xc8] sm:$0xff] %v2300_v45  ;;  %v2301_v50 = vpack.c.bf16 %v976_v48, %v974_v46  ;;  %v2302_v51 = vpack.c.bf16 %v1169_v49, %v1167_v47 }
 0x171   :  { %2059 = vst [vmem:[#allocation8 + $0xd0] sm:$0xff] %v2301_v50  ;;  %2060 = vst [vmem:[#allocation8 + $0xd8] sm:$0xff] %v2302_v51 }
 0x173   :  { %v980_v52 = vpop.f32.mrb[28].mxu0  ;;  %v1173_v53 = vpop.f32.mrb[28].mxu1 }
 0x174   :  { %v982_v54 = vpop.f32.mrb[29].mxu0  ;;  %v1175_v55 = vpop.f32.mrb[29].mxu1 }
 0x175   :  { %v2303_v56 = vpack.c.bf16 %v982_v54, %v980_v52  ;;  %v2304_v57 = vpack.c.bf16 %v1175_v55, %v1173_v53  ;;  %v984_v58 = vpop.f32.mrb[30].mxu0  ;;  %v1177_v59 = vpop.f32.mrb[30].mxu1 }
 0x176   :  { %v986_v60 = vpop.f32.mrb[31].mxu0  ;;  %v1179_v61 = vpop.f32.mrb[31].mxu1 }
 0x177   :  { %2061 = vst [vmem:[#allocation8 + $0xe0] sm:$0xff] %v2303_v56  ;;  %2062 = vst [vmem:[#allocation8 + $0xe8] sm:$0xff] %v2304_v57  ;;  %v2305_v62 = vpack.c.bf16 %v986_v60, %v984_v58  ;;  %v2306_v63 = vpack.c.bf16 %v1179_v61, %v1177_v59 }
 0x179   :  { %2063 = vst [vmem:[#allocation8 + $0xf0] sm:$0xff] %v2305_v62  ;;  %2064 = vst [vmem:[#allocation8 + $0xf8] sm:$0xff] %v2306_v63 }
 0x17b   :  { %v990_v0 = vpop.f32.mrb[32].mxu0  ;;  %v1183_v1 = vpop.f32.mrb[32].mxu1 }
 0x17c   :  { %v992_v2 = vpop.f32.mrb[33].mxu0  ;;  %v1185_v3 = vpop.f32.mrb[33].mxu1 }
 0x17d   :  { %v2307_v4 = vpack.c.bf16 %v992_v2, %v990_v0  ;;  %v2308_v5 = vpack.c.bf16 %v1185_v3, %v1183_v1  ;;  %v994_v6 = vpop.f32.mrb[34].mxu0  ;;  %v1187_v7 = vpop.f32.mrb[34].mxu1 }
 0x17e   :  { %v996_v8 = vpop.f32.mrb[35].mxu0  ;;  %v1189_v9 = vpop.f32.mrb[35].mxu1 }
 0x17f   :  { %2065 = vst [vmem:[#allocation8 + $0x100] sm:$0xff] %v2307_v4  ;;  %2066 = vst [vmem:[#allocation8 + $0x108] sm:$0xff] %v2308_v5  ;;  %v2309_v10 = vpack.c.bf16 %v996_v8, %v994_v6  ;;  %v2310_v11 = vpack.c.bf16 %v1189_v9, %v1187_v7 }
 0x181   :  { %2067 = vst [vmem:[#allocation8 + $0x110] sm:$0xff] %v2309_v10  ;;  %2068 = vst [vmem:[#allocation8 + $0x118] sm:$0xff] %v2310_v11 }
 0x183   :  { %v1000_v12 = vpop.f32.mrb[36].mxu0  ;;  %v1193_v13 = vpop.f32.mrb[36].mxu1 }
 0x184   :  { %v1002_v14 = vpop.f32.mrb[37].mxu0  ;;  %v1195_v15 = vpop.f32.mrb[37].mxu1 }
 0x185   :  { %v2311_v16 = vpack.c.bf16 %v1002_v14, %v1000_v12  ;;  %v2312_v17 = vpack.c.bf16 %v1195_v15, %v1193_v13  ;;  %v1004_v18 = vpop.f32.mrb[38].mxu0  ;;  %v1197_v19 = vpop.f32.mrb[38].mxu1 }
 0x186   :  { %v1006_v20 = vpop.f32.mrb[39].mxu0  ;;  %v1199_v21 = vpop.f32.mrb[39].mxu1 }
 0x187   :  { %2069 = vst [vmem:[#allocation8 + $0x120] sm:$0xff] %v2311_v16  ;;  %2070 = vst [vmem:[#allocation8 + $0x128] sm:$0xff] %v2312_v17  ;;  %v2313_v22 = vpack.c.bf16 %v1006_v20, %v1004_v18  ;;  %v2314_v23 = vpack.c.bf16 %v1199_v21, %v1197_v19 }
 0x189   :  { %2071 = vst [vmem:[#allocation8 + $0x130] sm:$0xff] %v2313_v22  ;;  %2072 = vst [vmem:[#allocation8 + $0x138] sm:$0xff] %v2314_v23 }
 0x18b   :  { %v1010_v24 = vpop.f32.mrb[40].mxu0  ;;  %v1203_v25 = vpop.f32.mrb[40].mxu1 }
 0x18c   :  { %v1012_v26 = vpop.f32.mrb[41].mxu0  ;;  %v1205_v27 = vpop.f32.mrb[41].mxu1 }
 0x18d   :  { %v2315_v28 = vpack.c.bf16 %v1012_v26, %v1010_v24  ;;  %v2316_v29 = vpack.c.bf16 %v1205_v27, %v1203_v25  ;;  %v1014_v30 = vpop.f32.mrb[42].mxu0  ;;  %v1207_v31 = vpop.f32.mrb[42].mxu1 }
 0x18e   :  { %v1016_v32 = vpop.f32.mrb[43].mxu0  ;;  %v1209_v33 = vpop.f32.mrb[43].mxu1 }
 0x18f   :  { %2073 = vst [vmem:[#allocation8 + $0x140] sm:$0xff] %v2315_v28  ;;  %2074 = vst [vmem:[#allocation8 + $0x148] sm:$0xff] %v2316_v29  ;;  %v2317_v34 = vpack.c.bf16 %v1016_v32, %v1014_v30  ;;  %v2318_v35 = vpack.c.bf16 %v1209_v33, %v1207_v31 }
 0x191   :  { %2075 = vst [vmem:[#allocation8 + $0x150] sm:$0xff] %v2317_v34  ;;  %2076 = vst [vmem:[#allocation8 + $0x158] sm:$0xff] %v2318_v35 }
 0x193   :  { %v1020_v36 = vpop.f32.mrb[44].mxu0  ;;  %v1213_v37 = vpop.f32.mrb[44].mxu1 }
 0x194   :  { %v1022_v38 = vpop.f32.mrb[45].mxu0  ;;  %v1215_v39 = vpop.f32.mrb[45].mxu1 }
 0x195   :  { %v2319_v40 = vpack.c.bf16 %v1022_v38, %v1020_v36  ;;  %v2320_v41 = vpack.c.bf16 %v1215_v39, %v1213_v37  ;;  %v1024_v42 = vpop.f32.mrb[46].mxu0  ;;  %v1217_v43 = vpop.f32.mrb[46].mxu1 }
 0x196   :  { %v1026_v44 = vpop.f32.mrb[47].mxu0  ;;  %v1219_v45 = vpop.f32.mrb[47].mxu1 }
 0x197   :  { %2077 = vst [vmem:[#allocation8 + $0x160] sm:$0xff] %v2319_v40  ;;  %2078 = vst [vmem:[#allocation8 + $0x168] sm:$0xff] %v2320_v41  ;;  %v2321_v46 = vpack.c.bf16 %v1026_v44, %v1024_v42  ;;  %v2322_v47 = vpack.c.bf16 %v1219_v45, %v1217_v43 }
 0x199   :  { %2079 = vst [vmem:[#allocation8 + $0x170] sm:$0xff] %v2321_v46  ;;  %2080 = vst [vmem:[#allocation8 + $0x178] sm:$0xff] %v2322_v47 }
 0x19b   :  { %v1030_v48 = vpop.f32.mrb[48].mxu0  ;;  %v1223_v49 = vpop.f32.mrb[48].mxu1 }
 0x19c   :  { %v1032_v50 = vpop.f32.mrb[49].mxu0  ;;  %v1225_v51 = vpop.f32.mrb[49].mxu1 }
 0x19d   :  { %v2323_v52 = vpack.c.bf16 %v1032_v50, %v1030_v48  ;;  %v2324_v53 = vpack.c.bf16 %v1225_v51, %v1223_v49  ;;  %v1034_v54 = vpop.f32.mrb[50].mxu0  ;;  %v1227_v55 = vpop.f32.mrb[50].mxu1 }
 0x19e   :  { %v1036_v56 = vpop.f32.mrb[51].mxu0  ;;  %v1229_v57 = vpop.f32.mrb[51].mxu1 }
 0x19f   :  { %2081 = vst [vmem:[#allocation8 + $0x180] sm:$0xff] %v2323_v52  ;;  %2082 = vst [vmem:[#allocation8 + $0x188] sm:$0xff] %v2324_v53  ;;  %v2325_v58 = vpack.c.bf16 %v1036_v56, %v1034_v54  ;;  %v2326_v59 = vpack.c.bf16 %v1229_v57, %v1227_v55 }
 0x1a1   :  { %2083 = vst [vmem:[#allocation8 + $0x190] sm:$0xff] %v2325_v58  ;;  %2084 = vst [vmem:[#allocation8 + $0x198] sm:$0xff] %v2326_v59 }
 0x1a3   :  { %v1040_v60 = vpop.f32.mrb[52].mxu0  ;;  %v1233_v61 = vpop.f32.mrb[52].mxu1 }
 0x1a4   :  { %v1042_v62 = vpop.f32.mrb[53].mxu0  ;;  %v1235_v63 = vpop.f32.mrb[53].mxu1 }
 0x1a5   :  { %v2327_v0 = vpack.c.bf16 %v1042_v62, %v1040_v60  ;;  %v2328_v1 = vpack.c.bf16 %v1235_v63, %v1233_v61  ;;  %v1044_v2 = vpop.f32.mrb[54].mxu0  ;;  %v1237_v3 = vpop.f32.mrb[54].mxu1 }
 0x1a6   :  { %v1046_v4 = vpop.f32.mrb[55].mxu0  ;;  %v1239_v5 = vpop.f32.mrb[55].mxu1 }
 0x1a7   :  { %2085 = vst [vmem:[#allocation8 + $0x1a0] sm:$0xff] %v2327_v0  ;;  %2086 = vst [vmem:[#allocation8 + $0x1a8] sm:$0xff] %v2328_v1  ;;  %v2329_v6 = vpack.c.bf16 %v1046_v4, %v1044_v2  ;;  %v2330_v7 = vpack.c.bf16 %v1239_v5, %v1237_v3 }
 0x1a9   :  { %2087 = vst [vmem:[#allocation8 + $0x1b0] sm:$0xff] %v2329_v6  ;;  %2088 = vst [vmem:[#allocation8 + $0x1b8] sm:$0xff] %v2330_v7 }
 0x1ab   :  { %v1050_v8 = vpop.f32.mrb[56].mxu0  ;;  %v1243_v9 = vpop.f32.mrb[56].mxu1 }
 0x1ac   :  { %v1052_v10 = vpop.f32.mrb[57].mxu0  ;;  %v1245_v11 = vpop.f32.mrb[57].mxu1 }
 0x1ad   :  { %v2331_v12 = vpack.c.bf16 %v1052_v10, %v1050_v8  ;;  %v2332_v13 = vpack.c.bf16 %v1245_v11, %v1243_v9  ;;  %v1054_v14 = vpop.f32.mrb[58].mxu0  ;;  %v1247_v15 = vpop.f32.mrb[58].mxu1 }
 0x1ae   :  { %v1056_v16 = vpop.f32.mrb[59].mxu0  ;;  %v1249_v17 = vpop.f32.mrb[59].mxu1 }
 0x1af   :  { %2089 = vst [vmem:[#allocation8 + $0x1c0] sm:$0xff] %v2331_v12  ;;  %2090 = vst [vmem:[#allocation8 + $0x1c8] sm:$0xff] %v2332_v13  ;;  %v2333_v18 = vpack.c.bf16 %v1056_v16, %v1054_v14  ;;  %v2334_v19 = vpack.c.bf16 %v1249_v17, %v1247_v15 }
 0x1b1   :  { %2091 = vst [vmem:[#allocation8 + $0x1d0] sm:$0xff] %v2333_v18  ;;  %2092 = vst [vmem:[#allocation8 + $0x1d8] sm:$0xff] %v2334_v19 }
 0x1b3   :  { %v1060_v20 = vpop.f32.mrb[60].mxu0  ;;  %v1253_v21 = vpop.f32.mrb[60].mxu1 }
 0x1b4   :  { %v1062_v22 = vpop.f32.mrb[61].mxu0  ;;  %v1255_v23 = vpop.f32.mrb[61].mxu1 }
 0x1b5   :  { %v2335_v24 = vpack.c.bf16 %v1062_v22, %v1060_v20  ;;  %v2336_v25 = vpack.c.bf16 %v1255_v23, %v1253_v21  ;;  %v1064_v26 = vpop.f32.mrb[62].mxu0  ;;  %v1257_v27 = vpop.f32.mrb[62].mxu1 }
 0x1b6   :  { %v1066_v28 = vpop.f32.mrb[63].mxu0  ;;  %v1259_v29 = vpop.f32.mrb[63].mxu1 }
 0x1b7   :  { %2093 = vst [vmem:[#allocation8 + $0x1e0] sm:$0xff] %v2335_v24  ;;  %2094 = vst [vmem:[#allocation8 + $0x1e8] sm:$0xff] %v2336_v25  ;;  %v2337_v30 = vpack.c.bf16 %v1066_v28, %v1064_v26  ;;  %v2338_v31 = vpack.c.bf16 %v1259_v29, %v1257_v27 }
 0x1b9   :  { %2095 = vst [vmem:[#allocation8 + $0x1f0] sm:$0xff] %v2337_v30  ;;  %2096 = vst [vmem:[#allocation8 + $0x1f8] sm:$0xff] %v2338_v31 }
 0x1ba   :  { %2545 = shalt.err (!%p2542_p6)
}
 0x1bb   :  { %s2546_s12 = scalar_lea.hbm %s2628_s2, 8192 }
 0x1bc   :  { %p2547_p7 = scmp.ne.s32.totalorder %s2628_s2, %s2546_s12  ;;  %p2550_p8 = scmp.lt.u32.totalorder %s2546_s12, %s2628_s2 }
 0x1be   :  { %p2552_p9 = pnand %p2550_p8, %p2547_p7 }
 0x1c0   :  { %2555 = shalt.err (!%p2552_p9)
}
 0x1c1   :  { %2108 = dma.vmem_to_hbm [thread:$0]  %s2103_s8, 8192, %s2628_s2, [#allocation5], %s2566_s0, %s2566_s0, %s2567_s5  }
 0x1c2   :  { %2560 = dma.done.wait [#allocation5], 8192  }
 0x1c3   :  { %2561 = vsyncadd [#allocation5], 4294959104 }
 0x1c4   :  { %2112 = vsyncpa [#allocation4], 1 }
 0x1c5   :  { %2113 = vsyncpa [#allocation7], 1 }
 0x1c6   :  { %2114 = vsyncpa [#allocation5], 1 }

</bundles_post_ra>
